<compile_context>
chip_gen: v7x
topology: tpu7x:2x2x1
jax: 0.10.0
libtpu: 0.0.40
codegen_flags: <defaults>
</compile_context>

<pallas_src>
import functools

import jax
import jax.numpy as jnp
from jax.experimental import pallas as pl
from jax.experimental.pallas import tpu as pltpu

# ----------------------------- model config (small synthetic sizes) ---------
BATCH = 8            # must be divisible by TEST_PATCHES (Chunk_Avg over dim 0)
CHANNELS = 4
SPATIAL = 16         # H = W = 16
FEATURE_DIM = 32     # stand-in for resnet50's 2048
HIDDEN_DIM = 64      # stand-in for 4096
NUM_CLASSES = 21
TEST_PATCHES = 4
BN_EPS = 1e-5
LANE = 128


def _round_up(n, m):
    return ((n + m - 1) // m) * m


# ----------------------------- Pallas kernel --------------------------------
def _encoder_kernel(x_ref, w_ref, out_ref, *, feature_dim, hidden_dim,
                    off_w1, off_wfc, off_vec, off_avg):
    F, Hd = feature_dim, hidden_dim
    B = x_ref.shape[0]

    # --- backbone stand-in: Linear(C->F) + ReLU (GAP already done in wrapper)
    wbb = w_ref[0:8, 0:F]                                   # rows C:8 are zero
    bbb = w_ref[off_vec + 0:off_vec + 1, 0:F]
    feat = jnp.dot(x_ref[...], wbb,
                   preferred_element_type=jnp.float32) + bbb
    feat = jnp.maximum(feat, 0.0)                           # [B, F]

    # --- predictor: Linear + BatchNorm1d(training, batch stats) + ReLU ------
    w1 = w_ref[off_w1:off_w1 + F, 0:Hd]
    b1 = w_ref[off_vec + 1:off_vec + 2, 0:Hd]
    gamma = w_ref[off_vec + 2:off_vec + 3, 0:Hd]
    beta = w_ref[off_vec + 3:off_vec + 4, 0:Hd]
    h = jnp.dot(feat, w1, preferred_element_type=jnp.float32) + b1   # [B, Hd]
    mu = jnp.mean(h, axis=0, keepdims=True)                 # [1, Hd]
    d = h - mu
    var = jnp.mean(d * d, axis=0, keepdims=True)            # two-pass: safe
    scale = gamma * jax.lax.rsqrt(var + BN_EPS)              # EUP rsqrt
    hn = jnp.maximum(d * scale + beta, 0.0)                  # [B, Hd]

    # --- Chunk_Avg via precomputed [8, B] averaging matrix (rows per:8 zero) -
    avg_mat = w_ref[off_avg:off_avg + 8, 0:B]
    avg = jnp.dot(avg_mat, hn, preferred_element_type=jnp.float32)   # [8, Hd]

    # --- fc: lane-dense (8, 128) full-tile unmasked store --------------------
    wfc = w_ref[off_wfc:off_wfc + Hd, :]                     # zero-padded lanes
    bfc = w_ref[off_vec + 4:off_vec + 5, :]
    out_ref[...] = jnp.dot(avg, wfc,
                           preferred_element_type=jnp.float32) + bfc


# ----------------------------- one-time parameter repacking ------------------
def pack_params(params, batch, num_chunks):
    """Repack all module params into ONE lane-dense [rows, 128] f32 tile."""
    wbb, bbb, w1, b1, gamma, beta, wfc, bfc = params
    C, F = wbb.shape
    Hd = w1.shape[1]
    N = wfc.shape[1]
    per = batch // num_chunks
    assert C <= 8 and F <= LANE and Hd <= LANE and N <= LANE
    assert batch % num_chunks == 0 and per <= 8 and batch <= LANE

    off_w1 = 8
    off_wfc = off_w1 + _round_up(F, 8)
    off_vec = off_wfc + _round_up(Hd, 8)
    off_avg = off_vec + 8
    rows = off_avg + 8

    wpk = jnp.zeros((rows, LANE), jnp.float32)
    wpk = wpk.at[0:C, 0:F].set(wbb.astype(jnp.float32))
    wpk = wpk.at[off_w1:off_w1 + F, 0:Hd].set(w1.astype(jnp.float32))
    wpk = wpk.at[off_wfc:off_wfc + Hd, 0:N].set(wfc.astype(jnp.float32))
    wpk = wpk.at[off_vec + 0, 0:F].set(bbb.reshape(-1))
    wpk = wpk.at[off_vec + 1, 0:Hd].set(b1.reshape(-1))
    wpk = wpk.at[off_vec + 2, 0:Hd].set(gamma.reshape(-1))
    wpk = wpk.at[off_vec + 3, 0:Hd].set(beta.reshape(-1))
    wpk = wpk.at[off_vec + 4, 0:N].set(bfc.reshape(-1))
    # Chunk_Avg matrix: avg[r, i*per + r] = 1/num_chunks for r < per.
    r = jnp.arange(8)[:, None]
    c = jnp.arange(batch)[None, :]
    avg_mat = jnp.where((r < per) & ((c % per) == r),
                        jnp.float32(1.0 / num_chunks), jnp.float32(0.0))
    wpk = wpk.at[off_avg:off_avg + 8, 0:batch].set(avg_mat)

    meta = dict(feature_dim=F, hidden_dim=Hd, num_classes=N,
                off_w1=off_w1, off_wfc=off_wfc, off_vec=off_vec,
                off_avg=off_avg)
    return wpk, meta


# ----------------------------- wrapper ---------------------------------------
def finetune_encoder_forward(x_nchw, wpk, meta, *, num_chunks=TEST_PATCHES):
    """x_nchw: [B, C, H, W] float32 (PyTorch NCHW convention)."""
    B, C, H, W = x_nchw.shape
    assert B % num_chunks == 0
    per = B // num_chunks
    F, Hd, N = meta["feature_dim"], meta["hidden_dim"], meta["num_classes"]

    # Global-average-pool in the XLA graph (fuses with the producer); pad
    # channels to the 8-row wbb tile the kernel contracts against.
    pooled = jnp.mean(x_nchw.reshape(B, C, H * W), axis=-1)          # [B, C]
    x_in = jnp.zeros((B, 8), jnp.float32).at[:, :C].set(pooled)

    flops = 2 * (B * 8 * F + B * F * Hd + 8 * B * Hd + 8 * Hd * LANE)
    bytes_accessed = 4 * (x_in.size + wpk.size + 8 * LANE)

    kernel = functools.partial(
        _encoder_kernel, feature_dim=F, hidden_dim=Hd,
        off_w1=meta["off_w1"], off_wfc=meta["off_wfc"],
        off_vec=meta["off_vec"], off_avg=meta["off_avg"])
    vmem = pl.BlockSpec(memory_space=pltpu.MemorySpace.VMEM)
    out_pad = pl.pallas_call(
        kernel,
        out_shape=jax.ShapeDtypeStruct((8, LANE), jnp.float32),
        in_specs=[vmem, vmem],
        out_specs=vmem,
        cost_estimate=pl.CostEstimate(flops=flops, transcendentals=Hd,
                                      bytes_accessed=bytes_accessed),
    )(x_in, wpk)
    return out_pad[:per, :N]


# ----------------------------- pure-JAX reference (for verification) --------
def finetune_encoder_ref(x_nchw, params, *, num_chunks=TEST_PATCHES):
    (wbb, bbb, w1, b1, gamma, beta, wfc, bfc) = params
    B = x_nchw.shape[0]
    pooled = jnp.mean(x_nchw.reshape(B, x_nchw.shape[1], -1), axis=-1)
    feat = jnp.maximum(pooled @ wbb + bbb, 0.0)
    h = feat @ w1 + b1
    mu = jnp.mean(h, axis=0, keepdims=True)
    var = jnp.mean((h - mu) ** 2, axis=0, keepdims=True)
    hn = gamma * ((h - mu) / jnp.sqrt(var + BN_EPS)) + beta
    hn = jnp.maximum(hn, 0.0)
    avg = jnp.mean(hn.reshape(num_chunks, B // num_chunks, -1), axis=0)
    return avg @ wfc + bfc


# ----------------------------- parameter init --------------------------------
def init_params(key):
    ks = jax.random.split(key, 6)
    wbb = jax.random.normal(ks[0], (CHANNELS, FEATURE_DIM), jnp.float32) * 0.1
    bbb = jnp.zeros((1, FEATURE_DIM), jnp.float32)
    w1 = jax.random.normal(ks[1], (FEATURE_DIM, HIDDEN_DIM), jnp.float32) * 0.1
    b1 = jax.random.normal(ks[2], (1, HIDDEN_DIM), jnp.float32) * 0.01
    gamma = jnp.ones((1, HIDDEN_DIM), jnp.float32)
    beta = jnp.zeros((1, HIDDEN_DIM), jnp.float32)
    wfc = jax.random.normal(ks[3], (HIDDEN_DIM, NUM_CLASSES), jnp.float32) * 0.1
    bfc = jax.random.normal(ks[4], (1, NUM_CLASSES), jnp.float32) * 0.01
    return (wbb, bbb, w1, b1, gamma, beta, wfc, bfc)


if __name__ == "__main__":
    key = jax.random.PRNGKey(0)
    k_x, k_p = jax.random.split(key)
    x = jax.random.normal(k_x, (BATCH, CHANNELS, SPATIAL, SPATIAL), jnp.float32)
    params = init_params(k_p)

    wpk, meta = pack_params(params, BATCH, TEST_PATCHES)
    out = finetune_encoder_forward(x, wpk, meta, num_chunks=TEST_PATCHES)
    out = jax.block_until_ready(out)

    ref = finetune_encoder_ref(x, params, num_chunks=TEST_PATCHES)
    assert out.shape == (BATCH // TEST_PATCHES, NUM_CLASSES), out.shape
    assert jnp.allclose(out, ref, atol=2e-4, rtol=2e-4), (
        float(jnp.max(jnp.abs(out - ref))))

    print("KERNEL_OK")
</pallas_src>

<mosaic_0001>
module attributes {stable_mosaic.version = 11 : i64} {
  func.func @_encoder_kernel(%arg0: memref<8x8xf32, #tpu.memory_space<vmem>>, %arg1: memref<120x128xf32, #tpu.memory_space<vmem>>, %arg2: memref<8x128xf32, #tpu.memory_space<vmem>>) attributes {dimension_semantics = [], scalar_prefetch = 0 : i64, scratch_operands = 0 : i64, tpu.core_type = #tpu.core_type<tc>} {
    %c0 = arith.constant 0 : index
    %c0_0 = arith.constant 0 : index
    %0 = vector.load %arg1[%c0, %c0_0] : memref<120x128xf32, #tpu.memory_space<vmem>>, vector<8x32xf32>
    %c104 = arith.constant 104 : index
    %c0_1 = arith.constant 0 : index
    %1 = vector.load %arg1[%c104, %c0_1] : memref<120x128xf32, #tpu.memory_space<vmem>>, vector<1x32xf32>
    %c0_2 = arith.constant 0 : index
    %c0_3 = arith.constant 0 : index
    %2 = vector.load %arg0[%c0_2, %c0_3] : memref<8x8xf32, #tpu.memory_space<vmem>>, vector<8x8xf32>
    %cst = arith.constant dense<0.000000e+00> : vector<8x32xf32>
    %3 = tpu.matmul %2, %0, %cst {dimension_numbers = #tpu.dot_dimension_numbers<[1], [0], [0], [1], [0, 0, 1, 1], [], []>} : vector<8x8xf32>, vector<8x32xf32>, vector<8x32xf32> -> vector<8x32xf32>
    %4 = vector.broadcast %1 : vector<1x32xf32> to vector<8x32xf32>
    %5 = arith.addf %3, %4 : vector<8x32xf32>
    %cst_4 = arith.constant 0.000000e+00 : f32
    %6 = vector.broadcast %cst_4 : f32 to vector<8x32xf32>
    %7 = arith.maximumf %5, %6 : vector<8x32xf32>
    %c8 = arith.constant 8 : index
    %c0_5 = arith.constant 0 : index
    %8 = vector.load %arg1[%c8, %c0_5] : memref<120x128xf32, #tpu.memory_space<vmem>>, vector<32x64xf32>
    %c105 = arith.constant 105 : index
    %c0_6 = arith.constant 0 : index
    %9 = vector.load %arg1[%c105, %c0_6] : memref<120x128xf32, #tpu.memory_space<vmem>>, vector<1x64xf32>
    %c106 = arith.constant 106 : index
    %c0_7 = arith.constant 0 : index
    %10 = vector.load %arg1[%c106, %c0_7] : memref<120x128xf32, #tpu.memory_space<vmem>>, vector<1x64xf32>
    %c107 = arith.constant 107 : index
    %c0_8 = arith.constant 0 : index
    %11 = vector.load %arg1[%c107, %c0_8] : memref<120x128xf32, #tpu.memory_space<vmem>>, vector<1x64xf32>
    %cst_9 = arith.constant dense<0.000000e+00> : vector<8x64xf32>
    %12 = tpu.matmul %7, %8, %cst_9 {dimension_numbers = #tpu.dot_dimension_numbers<[1], [0], [0], [1], [0, 0, 1, 1], [], []>} : vector<8x32xf32>, vector<32x64xf32>, vector<8x64xf32> -> vector<8x64xf32>
    %13 = vector.broadcast %9 : vector<1x64xf32> to vector<8x64xf32>
    %14 = arith.addf %12, %13 : vector<8x64xf32>
    %cst_10 = arith.constant dense<0.000000e+00> : vector<64xf32>
    %15 = vector.multi_reduction <add>, %14, %cst_10 [0] : vector<8x64xf32> to vector<64xf32>
    %16 = vector.shape_cast %15 : vector<64xf32> to vector<1x64xf32>
    %cst_11 = arith.constant 8.000000e+00 : f32
    %17 = vector.broadcast %cst_11 : f32 to vector<1x64xf32>
    %18 = arith.divf %16, %17 : vector<1x64xf32>
    %19 = vector.broadcast %18 : vector<1x64xf32> to vector<8x64xf32>
    %20 = arith.subf %14, %19 : vector<8x64xf32>
    %21 = arith.mulf %20, %20 : vector<8x64xf32>
    %cst_12 = arith.constant dense<0.000000e+00> : vector<64xf32>
    %22 = vector.multi_reduction <add>, %21, %cst_12 [0] : vector<8x64xf32> to vector<64xf32>
    %23 = vector.shape_cast %22 : vector<64xf32> to vector<1x64xf32>
    %cst_13 = arith.constant 8.000000e+00 : f32
    %24 = vector.broadcast %cst_13 : f32 to vector<1x64xf32>
    %25 = arith.divf %23, %24 : vector<1x64xf32>
    %cst_14 = arith.constant 9.99999974E-6 : f32
    %26 = vector.broadcast %cst_14 : f32 to vector<1x64xf32>
    %27 = arith.addf %25, %26 : vector<1x64xf32>
    %28 = math.rsqrt %27 : vector<1x64xf32>
    %29 = arith.mulf %10, %28 : vector<1x64xf32>
    %30 = vector.broadcast %29 : vector<1x64xf32> to vector<8x64xf32>
    %31 = arith.mulf %20, %30 : vector<8x64xf32>
    %32 = vector.broadcast %11 : vector<1x64xf32> to vector<8x64xf32>
    %33 = arith.addf %31, %32 : vector<8x64xf32>
    %cst_15 = arith.constant 0.000000e+00 : f32
    %34 = vector.broadcast %cst_15 : f32 to vector<8x64xf32>
    %35 = arith.maximumf %33, %34 : vector<8x64xf32>
    %c112 = arith.constant 112 : index
    %c0_16 = arith.constant 0 : index
    %36 = vector.load %arg1[%c112, %c0_16] : memref<120x128xf32, #tpu.memory_space<vmem>>, vector<8x8xf32>
    %cst_17 = arith.constant dense<0.000000e+00> : vector<8x64xf32>
    %37 = tpu.matmul %36, %35, %cst_17 {dimension_numbers = #tpu.dot_dimension_numbers<[1], [0], [0], [1], [0, 0, 1, 1], [], []>} : vector<8x8xf32>, vector<8x64xf32>, vector<8x64xf32> -> vector<8x64xf32>
    %c40 = arith.constant 40 : index
    %c0_18 = arith.constant 0 : index
    %38 = vector.load %arg1[%c40, %c0_18] : memref<120x128xf32, #tpu.memory_space<vmem>>, vector<64x128xf32>
    %c108 = arith.constant 108 : index
    %c0_19 = arith.constant 0 : index
    %39 = vector.load %arg1[%c108, %c0_19] : memref<120x128xf32, #tpu.memory_space<vmem>>, vector<1x128xf32>
    %cst_20 = arith.constant dense<0.000000e+00> : vector<8x128xf32>
    %40 = tpu.matmul %37, %38, %cst_20 {dimension_numbers = #tpu.dot_dimension_numbers<[1], [0], [0], [1], [0, 0, 1, 1], [], []>} : vector<8x64xf32>, vector<64x128xf32>, vector<8x128xf32> -> vector<8x128xf32>
    %41 = vector.broadcast %39 : vector<1x128xf32> to vector<8x128xf32>
    %42 = arith.addf %40, %41 : vector<8x128xf32>
    %c0_21 = arith.constant 0 : index
    %c0_22 = arith.constant 0 : index
    %43 = vector.load %arg2[%c0_21, %c0_22] : memref<8x128xf32, #tpu.memory_space<vmem>>, vector<8x128xf32>
    tpu.vector_store %arg2[%c0_21, %c0_22], %42 {strides = array<i32>} : memref<8x128xf32, #tpu.memory_space<vmem>>, vector<8x128xf32>,
    return
  }
}

</mosaic_0001>

<bundles_post_ra>
// kernel: tpu_custom_call.1
= control target key start
LH: loop header
LB: loop body
LE: loop exit
PB: predicated region body
PF: predicated region fallthrough
CT: control target
= control target key end

     0   :  { %7 = vsyncpa [#allocation3], 0  ;;  %s657_s0 = inlined_call_operand.hbm [shape: f32[8,8], index: 0, kind: input, shape index: {}]   ;;  %s658_s1 = inlined_call_operand.hbm [shape: f32[120,128], index: 1, kind: input, shape index: {}]   ;;  %s659_s2 = inlined_call_operand.hbm [shape: f32[8,128], index: 2, kind: output, shape index: {}]  }
   0x1   :  { %8 = vsyncpa [#allocation6], 0 }
   0x2   :  { %9 = vsyncpa [#allocation4], 0  ;;  %s582_s9 = smov [#allocation2]   ;;  %s583_s11 = smov [#allocation5]  }
   0x3   :  { %s16_s10 = sshll.u32 %s582_s9, 4  ;;  %s25_s12 = sshll.u32 %s583_s11, 4  ;;  %s17_s10 = int_to_ptr.vmem [resolvable:$true] %s16_s10  ;;  %s605_s12 = int_to_ptr.vmem [resolvable:$true] %s25_s12 }
   0x4   :  { %s510_s15 = scalar_lea.hbm %s657_s0, 128 }
   0x5   :  { %p511_p0 = scmp.ne.s32.totalorder %s657_s0, %s510_s15  ;;  %p514_p1 = scmp.lt.u32.totalorder %s510_s15, %s657_s0 }
   0x7   :  { %p516_p2 = pnand %p514_p1, %p511_p0 }
   0x9   :  { %519 = shalt.err (!%p516_p2)
}
   0xa   :  { %s520_s20 = scalar_lea.vmem %s17_s10, 128  ;;  %p525_p4 = scmp.lt.s32.totalorder %s17_s10, %s17_s10 }
   0xb   :  { %p521_p3 = scmp.ne.s32.totalorder %s17_s10, %s520_s20  ;;  %p526_p5 = scmp.lt.s32.totalorder %s520_s20, %s520_s20 }
   0xd   :  { %p527_p6 = por %p526_p5, %p525_p4 }
   0xf   :  { %p528_p7 = pnand %p527_p6, %p521_p3 }
  0x11   :  { %531 = shalt.err (!%p528_p7)
}
  0x12   :  { %19 = dma.hbm_to_vmem [thread:$0]  %s657_s0, 128, %s17_s10, [#allocation3]  }
  0x13   :  { %s532_s25 = scalar_lea.hbm %s658_s1, 1920 }
  0x14   :  { %p533_p8 = scmp.ne.s32.totalorder %s658_s1, %s532_s25  ;;  %p536_p9 = scmp.lt.u32.totalorder %s532_s25, %s658_s1 }
  0x16   :  { %p538_p10 = pnand %p536_p9, %p533_p8 }
  0x18   :  { %541 = shalt.err (!%p538_p10)
}
  0x19   :  { %s542_s30 = scalar_lea.vmem %s605_s12, 1920  ;;  %p547_p12 = scmp.lt.s32.totalorder %s605_s12, %s605_s12 }
  0x1a   :  { %p543_p11 = scmp.ne.s32.totalorder %s605_s12, %s542_s30  ;;  %p548_p13 = scmp.lt.s32.totalorder %s542_s30, %s542_s30 }
  0x1c   :  { %p549_p0 = por %p548_p13, %p547_p12 }
  0x1e   :  { %p550_p1 = pnand %p549_p0, %p543_p11 }
  0x20   :  { %553 = shalt.err (!%p550_p1)
}
  0x21   :  { %s584_s0 = smov 128   ;;  %s585_s3 = smov 8  }
  0x22   :  { %31 = dma.hbm_to_vmem [thread:$0]  %s658_s1, 1920, %s605_s12, [#allocation6], %s584_s0, %s584_s0, %s585_s3  }
  0x23   :  { %576 = dma.done.wait [#allocation3], 128  }
  0x24   :  { %577 = vsyncadd [#allocation3], 4294967168 }
  0x25   :  { %578 = dma.done.wait [#allocation6], 1920  }
  0x26   :  { %579 = vsyncadd [#allocation6], 4294965376  ;;  %v586_v0 = vmov 0.0   ;;  %vm587_vm0 = vmmov 0   ;;  %v588_v1 = vmov 0.0|0.0   ;;  %vm45_vm1 = vcmask 64512  }
  0x27   :  { %442 = vmatprep.subr.mxu1 %v586_v0  ;;  %444 = vmatprep.mubr.msk.f32.mxu1 %vm587_vm0, %v586_v0  ;;  %v38_v2 = vld [vmem:[#allocation5] sm:$0xff]  ;;  %v40_v3 = vld [vmem:[#allocation2] sm:$0xff]  ;;  %v120_v4 = vld [vmem:[#allocation5 + $0x8] sm:$0xff]  ;;  %vm131_vm2 = vcmask 261120   ;;  %vm205_vm3 = vcmask 523264   ;;  %v228_v50 = vlaneseq  ;;  %s589_s1 = smov [#allocation7]  }
  0x28   :  { %488 = vmatprep.subr.bf16.mxu0 %v588_v1  ;;  %479 = vmatprep.mubr.msk.f32.mxu0 %vm587_vm0, %v586_v0  ;;  %v121_v5 = vld [vmem:[#allocation5 + $0x10] sm:$0xff]  ;;  %v122_v7 = vld [vmem:[#allocation5 + $0x18] sm:$0xff]  ;;  %v123_v8 = vld [vmem:[#allocation5 + $0x20] sm:$0xff]  ;;  %s406_s6 = sshll.u32 %s589_s1, 4  ;;  %s407_s6 = int_to_ptr.vmem [resolvable:$true] %s406_s6 }
  0x29   :  { %443 = vmatpush3.msra.mxu1 %v38_v2  ;;  %v483_v6 = vpack.c.bf16 %v121_v5, %v120_v4  ;;  %v486_v9 = vpack.c.bf16 %v123_v8, %v122_v7  ;;  %v416_v10 = vld [vmem:[#allocation5 + $0x68] ss:$0 sm:$0xff]  ;;  %v314_v16 = vld [vmem:[#allocation5 + $0x30] sm:$0xff]  ;;  %v315_v17 = vld [vmem:[#allocation5 + $0x38] sm:$0xff]  ;;  %v229_v51 = vshrl.u32 %v228_v50, 7  ;;  %s554_s7 = scalar_lea.vmem %s407_s6, 128  ;;  %p559_p3 = scmp.lt.s32.totalorder %s407_s6, %s407_s6 }
  0x2a   :  { %445 = vmatmul.mubr.msk.f32.vlgmr.msra.gmra.mrb[0].mxu1 %vm45_vm1, %v40_v3  ;;  %482 = vmatprep.subr.bf16.mxu1 %v588_v1  ;;  %v313_v15 = vld [vmem:[#allocation5 + $0x28] sm:$0xff]  ;;  %v316_v19 = vld [vmem:[#allocation5 + $0x40] sm:$0xff]  ;;  %v318_v22 = vld [vmem:[#allocation5 + $0x50] sm:$0xff]  ;;  %p555_p2 = scmp.ne.s32.totalorder %s407_s6, %s554_s7  ;;  %p560_p4 = scmp.lt.s32.totalorder %s554_s7, %s554_s7 }
  0x2b   :  { %455 = vmatprep.mubr.msk.f32.mxu1 %vm587_vm0, %v586_v0  ;;  %484 = vmatpush3.bf16.msra.mxu1 %v483_v6  ;;  %v489_v18 = vpack.c.bf16 %v314_v16, %v313_v15  ;;  %v492_v20 = vpack.c.bf16 %v316_v19, %v315_v17  ;;  %v317_v21 = vld [vmem:[#allocation5 + $0x48] sm:$0xff]  ;;  %v319_v24 = vld [vmem:[#allocation5 + $0x58] sm:$0xff]  ;;  %v320_v25 = vld [vmem:[#allocation5 + $0x60] sm:$0xff]  ;;  %v230_v53 = vsub.s32 0, %v229_v51 }
  0x2c   :  { %485 = vmatprep.subr.bf16.mxu1 %v588_v1  ;;  %v495_v23 = vpack.c.bf16 %v318_v22, %v317_v21  ;;  %v498_v26 = vpack.c.bf16 %v320_v25, %v319_v24  ;;  %v418_v27 = vld [vmem:[#allocation5 + $0x69] ss:$0 sm:$0xff]  ;;  %v125_v52 = vld [vmem:[#allocation5 + $0x6a] sm:$0x1]  ;;  %v420_v57 = vld [vmem:[#allocation5 + $0x6b] ss:$0 sm:$0xff]  ;;  %p561_p5 = por %p560_p4, %p559_p3 }
  0x2d   :  { %490 = vmatpush3.bf16.msra.mxu0 %v489_v18  ;;  %v239_v61 = vld [vmem:[#allocation5 + $0x70] sm:$0xff] }
  0x2e   :  { %491 = vmatprep.subr.bf16.mxu0 %v588_v1  ;;  %p562_p6 = pnand %p561_p5, %p555_p2 }
  0x2f   :  { %487 = vmatpush3.bf16.msra.mxu1 %v486_v9 }
  0x30   :  { %458 = vmatprep.subr.mxu1 %v586_v0 }
  0x31   :  { %493 = vmatpush3.bf16.msra.mxu0 %v492_v20 }
  0x32   :  { %494 = vmatprep.subr.bf16.mxu0 %v588_v1 }
  0x35   :  { %496 = vmatpush3.bf16.msra.mxu0 %v495_v23 }
  0x36   :  { %497 = vmatprep.subr.bf16.mxu0 %v588_v1 }
  0x39   :  { %499 = vmatpush3.bf16.msra.mxu0 %v498_v26 }
  0xfd   :  { %v115_v11 = vpop.f32.mrb[0].mxu1 }
  0xfe   :  { %v116_v12 = vadd.f32 %v416_v10, %v115_v11  ;;  %v446_v13 = vpop.f32.mrb[1].mxu1 }
 0x100   :  { %v119_v14 = vmax.f32 %v116_v12, 0.0 }
 0x102   :  { %456 = vmatmul.mubr.msk.f32.vlgmr.msra.gmra.mrb[2].mxu1 %vm131_vm2, %v119_v14 }
 0x103   :  { %460 = vmatprep.mubr.msk.f32.mxu1 %vm587_vm0, %v586_v0  ;;  %v422_v0 = vld [vmem:[#allocation5 + $0x6c] ss:$0 sm:$0xff] }
 0x1d5   :  { %v201_v28 = vpop.f32.mrb[2].mxu1 }
 0x1d6   :  { %v202_v29 = vadd.f32 %v418_v27, %v201_v28  ;;  %v457_v30 = vpop.f32.mrb[3].mxu1 }
 0x1d8   :  { %v206_v31 = vsel %vm205_vm3, %v202_v29, 0.0 }
 0x1d9   :  { %v207_v32 = vrot.slane %v206_v31, 4 }
 0x1db   :  { %v208_v33 = vadd.f32 %v207_v32, %v206_v31 }
 0x1dd   :  { %v209_v34 = vrot.slane %v208_v33, 2 }
 0x1df   :  { %v210_v35 = vadd.f32 %v209_v34, %v208_v33 }
 0x1e1   :  { %v211_v36 = vrot.slane %v210_v35, 1 }
 0x1e3   :  { %v212_v37 = vadd.f32 %v211_v36, %v210_v35 }
 0x1e5   :  { %v214_v38 = vmul.f32 0.125, %v212_v37 }
 0x1e7   :  { %v215_v39 = vsub.f32 %v202_v29, %v214_v38 }
 0x1e9   :  { %v216_v40 = vmul.f32 %v215_v39, %v215_v39 }
 0x1eb   :  { %v217_v41 = vsel %vm205_vm3, %v216_v40, 0.0 }
 0x1ec   :  { %v218_v42 = vrot.slane %v217_v41, 4 }
 0x1ee   :  { %v219_v43 = vadd.f32 %v218_v42, %v217_v41 }
 0x1f0   :  { %v220_v44 = vrot.slane %v219_v43, 2 }
 0x1f2   :  { %v221_v45 = vadd.f32 %v220_v44, %v219_v43 }
 0x1f4   :  { %v222_v46 = vrot.slane %v221_v45, 1 }
 0x1f6   :  { %v223_v47 = vadd.f32 %v222_v46, %v221_v45 }
 0x1f8   :  { %v224_v48 = vmul.f32 0.125, %v223_v47 }
 0x1fa   :  { %v225_v49 = vadd.f32 1e-05, %v224_v48 }
 0x1fc   :  { %508 = vrsqrt.f32 %v225_v49 }
 0x206   :  { %v509_v54 = vpop.eup %508 }
 0x207   :  { %v227_v55 = vmul.f32 %v509_v54, %v125_v52 }
 0x209   :  { %v231_v56 = vrot.slane %v227_v55, %v230_v53 }
 0x20b   :  { %v232_v58 = vmul.f32 %v231_v56, %v215_v39 }
 0x20d   :  { %v237_v59 = vadd.f32 %v420_v57, %v232_v58 }
 0x20f   :  { %v238_v60 = vmax.f32 %v237_v59, 0.0 }
 0x211   :  { %459 = vmatpush3.msra.mxu1 %v238_v60 }
 0x212   :  { %461 = vmatmul.mubr.msk.f32.vlgmr.msra.gmra.mrb[4].mxu1 %vm45_vm1, %v239_v61 }
 0x2e5   :  { %v309_v62 = vpop.f32.mrb[4].mxu1 }
 0x2e6   :  { %v462_v63 = vpop.f32.mrb[5].mxu1  ;;  %480 = vmatmul.mubr.msk.f32.vlgmr.msra.gmra.mrb[0].mxu0 %vm205_vm3, %v309_v62 }
 0x3b9   :  { %v395_v1 = vpop.f32.mrb[0].mxu0 }
 0x3ba   :  { %v396_v2 = vadd.f32 %v422_v0, %v395_v1  ;;  %v481_v3 = vpop.f32.mrb[1].mxu0 }
 0x3bc   :  { %399 = vst [vmem:[#allocation7] sm:$0xff] %v396_v2 }
 0x3bd   :  { %565 = shalt.err (!%p562_p6)
}
 0x3be   :  { %s566_s10 = scalar_lea.hbm %s659_s2, 128 }
 0x3bf   :  { %p567_p7 = scmp.ne.s32.totalorder %s659_s2, %s566_s10  ;;  %p570_p8 = scmp.lt.u32.totalorder %s566_s10, %s659_s2 }
 0x3c1   :  { %p572_p9 = pnand %p570_p8, %p567_p7 }
 0x3c3   :  { %575 = shalt.err (!%p572_p9)
}
 0x3c4   :  { %409 = dma.vmem_to_hbm [thread:$0]  %s407_s6, 128, %s659_s2, [#allocation4]  }
 0x3c5   :  { %580 = dma.done.wait [#allocation4], 128  }
 0x3c6   :  { %581 = vsyncadd [#allocation4], 4294967168 }
 0x3c7   :  { %413 = vsyncpa [#allocation3], 1 }
 0x3c8   :  { %414 = vsyncpa [#allocation6], 1 }
 0x3c9   :  { %415 = vsyncpa [#allocation4], 1 }

</bundles_post_ra>
